<compile_context>
chip_gen: v7x
topology: tpu7x:2x2x1
jax: 0.10.0
libtpu: 0.0.40
codegen_flags: <defaults>
</compile_context>

<pallas_src>
import functools

import jax
import jax.numpy as jnp
from jax import lax
from jax.experimental import pallas as pl
from jax.experimental.pallas import tpu as pltpu

BN_EPS = 1e-3


def _basic_fc_kernel(x_ref, w_ref, gamma_ref, beta_ref, o_ref, *, mxu_dtype):
    # x_ref:     (N, Cin)        full batch, resident across the Cout grid
    # w_ref:     (TILE_C, Cin)   weight tile (untransposed PyTorch layout)
    # gamma_ref: (1, TILE_C)
    # beta_ref:  (1, TILE_C)
    # o_ref:     (N, TILE_C)
    x = x_ref[...]
    w = w_ref[...]
    if mxu_dtype is not None:
        x = x.astype(mxu_dtype)
        w = w.astype(mxu_dtype)

    # y = x @ W.T  (contract Cin with Cin), f32 accumulation on the MXU.
    # Linear bias is intentionally omitted: training-mode BN's mean
    # subtraction removes it exactly.
    y = lax.dot_general(
        x, w,
        dimension_numbers=(((1,), (1,)), ((), ())),
        preferred_element_type=jnp.float32,
    )

    # BatchNorm1d (training mode, biased batch variance) folded into a single
    # per-feature scale/shift; one reduction pass over y.
    n = y.shape[0]
    inv_n = 1.0 / n
    mean = jnp.sum(y, axis=0, keepdims=True) * inv_n          # (1, TILE_C)
    mean_sq = jnp.sum(y * y, axis=0, keepdims=True) * inv_n
    var = mean_sq - mean * mean
    inv_std = lax.rsqrt(var + BN_EPS)                         # EUP rsqrt
    scale = gamma_ref[...] * inv_std
    shift = beta_ref[...] - mean * scale

    o_ref[...] = jnp.maximum(y * scale + shift, 0.0).astype(o_ref.dtype)


def _pick_tile_c(cout):
    # Lane-dense (multiple-of-128) Cout tiles; cap at 256 so wide layers still
    # get several pipelined grid steps.  Fall back to one full-width tile when
    # Cout is not 128-aligned.
    for t in (256, 128):
        if cout % t == 0:
            return t
    return cout


def basic_fc(x, weight, bias, gamma, beta, *, mxu_dtype=None):
    """Fused Linear -> BatchNorm1d(train, eps=1e-3) -> ReLU.

    x: (N, Cin) f32, weight: (Cout, Cin), bias: (Cout,) [accepted for API
    parity but unused: it cancels exactly under training-mode BN mean
    subtraction], gamma/beta: (Cout,).
    """
    del bias  # exactly cancelled by the batch-mean subtraction in BN(train)
    n, cin = x.shape
    cout = weight.shape[0]

    tile_c = _pick_tile_c(cout)
    grid = (cout // tile_c,)

    g2 = gamma.reshape(1, cout)
    b2 = beta.reshape(1, cout)

    kernel = functools.partial(_basic_fc_kernel, mxu_dtype=mxu_dtype)

    # VMEM budget: resident x + double-buffered (weight tile, gamma, beta, out
    # tile).  Clamp with headroom so the plan also fits v7x's 64 MiB VMEM.
    elem = 4
    vmem_needed = elem * (n * cin + 2 * (tile_c * cin + 2 * tile_c + n * tile_c))
    vmem_limit = int(min(max(2 * vmem_needed, 32 * 1024 * 1024),
                         48 * 1024 * 1024))

    return pl.pallas_call(
        kernel,
        out_shape=jax.ShapeDtypeStruct((n, cout), jnp.float32),
        grid_spec=pltpu.PrefetchScalarGridSpec(
            num_scalar_prefetch=0,
            grid=grid,
            in_specs=[
                pl.BlockSpec((n, cin), lambda j: (0, 0)),       # x (resident)
                pl.BlockSpec((tile_c, cin), lambda j: (j, 0)),  # weight tile
                pl.BlockSpec((1, tile_c), lambda j: (0, j)),    # gamma tile
                pl.BlockSpec((1, tile_c), lambda j: (0, j)),    # beta tile
            ],
            out_specs=pl.BlockSpec((n, tile_c), lambda j: (0, j)),
        ),
        compiler_params=pltpu.CompilerParams(
            dimension_semantics=("parallel",),
            vmem_limit_bytes=vmem_limit,
        ),
    )(x, weight, g2, b2)


def basic_fc_ref(x, weight, bias, gamma, beta):
    """Pure-JAX reference mirroring PyTorch BasicFC.forward (training-mode BN)."""
    y = x @ weight.T + bias
    mean = jnp.mean(y, axis=0, keepdims=True)
    var = jnp.mean((y - mean) ** 2, axis=0, keepdims=True)
    y_hat = (y - mean) / jnp.sqrt(var + BN_EPS)
    return jnp.maximum(y_hat * gamma + beta, 0.0)


if __name__ == "__main__":
    key = jax.random.PRNGKey(0)
    keys = jax.random.split(key, 9)

    # Small shapes consistent with the module's textual-kernel branches:
    # tt: (batch, lstm_hidden_state_dim) -> fc1 -> fc2  (2048 scaled to 512).
    batch = 8
    lstm_dim = 32
    hidden = 512

    tt = jax.random.normal(keys[0], (batch, lstm_dim), dtype=jnp.float32)

    def init_fc(kw, kb, kg, kbe, cin, cout):
        bound = 1.0 / (cin ** 0.5)
        w = jax.random.uniform(kw, (cout, cin), minval=-bound, maxval=bound,
                               dtype=jnp.float32)
        b = jax.random.uniform(kb, (cout,), minval=-bound, maxval=bound,
                               dtype=jnp.float32)
        g = 1.0 + 0.1 * jax.random.normal(kg, (cout,), dtype=jnp.float32)
        be = 0.1 * jax.random.normal(kbe, (cout,), dtype=jnp.float32)
        return w, b, g, be

    w1, b1, g1, be1 = init_fc(keys[1], keys[2], keys[3], keys[4], lstm_dim, hidden)
    w2, b2, g2, be2 = init_fc(keys[5], keys[6], keys[7], keys[8], hidden, hidden)

    # fc1_tweetTxt_k*-style layer followed by fc2_tweetTxt_k*-style layer.
    h1 = basic_fc(tt, w1, b1, g1, be1)
    h2 = basic_fc(h1, w2, b2, g2, be2)
    h2 = jax.block_until_ready(h2)

    assert h1.shape == (batch, hidden)
    assert h2.shape == (batch, hidden)

    r1 = basic_fc_ref(tt, w1, b1, g1, be1)
    assert jnp.allclose(h1, r1, atol=1e-4, rtol=1e-4), "fc1 mismatch vs reference"

    r2 = basic_fc_ref(h1, w2, b2, g2, be2)   # layer-2 check on identical input
    assert jnp.allclose(h2, r2, atol=1e-4, rtol=1e-4), "fc2 mismatch vs reference"

    print("KERNEL_OK")
</pallas_src>

<mosaic_0001>
module attributes {stable_mosaic.version = 11 : i64} {
  func.func @_basic_fc_kernel(%arg0: i32, %arg1: memref<8x32xf32, #tpu.memory_space<vmem>>, %arg2: memref<256x32xf32, #tpu.memory_space<vmem>>, %arg3: memref<1x256xf32, #tpu.memory_space<vmem>>, %arg4: memref<1x256xf32, #tpu.memory_space<vmem>>, %arg5: memref<8x256xf32, #tpu.memory_space<vmem>>) attributes {dimension_semantics = [#tpu.dimension_semantics<parallel>], iteration_bounds = array<i64: 2>, scalar_prefetch = 0 : i64, scratch_operands = 0 : i64, tpu.core_type = #tpu.core_type<tc>, window_params = [{pipeline_mode = #tpu.pipeline_mode<synchronous>, transform_indices = @transform_0, window_bounds = array<i64: 8, 32>}, {transform_indices = @transform_1, window_bounds = array<i64: 256, 32>}, {transform_indices = @transform_2, window_bounds = array<i64: 1, 256>}, {transform_indices = @transform_3, window_bounds = array<i64: 1, 256>}, {transform_indices = @transform_4, window_bounds = array<i64: 8, 256>}]} {
    %c0 = arith.constant 0 : index
    %c0_0 = arith.constant 0 : index
    %0 = vector.load %arg1[%c0, %c0_0] : memref<8x32xf32, #tpu.memory_space<vmem>>, vector<8x32xf32>
    %c0_1 = arith.constant 0 : index
    %c0_2 = arith.constant 0 : index
    %1 = vector.load %arg2[%c0_1, %c0_2] : memref<256x32xf32, #tpu.memory_space<vmem>>, vector<256x32xf32>
    %cst = arith.constant dense<0.000000e+00> : vector<8x256xf32>
    %2 = tpu.matmul %0, %1, %cst {dimension_numbers = #tpu.dot_dimension_numbers<[1], [1], [0], [0], [0, 0, 1, 0], [], []>} : vector<8x32xf32>, vector<256x32xf32>, vector<8x256xf32> -> vector<8x256xf32>
    %cst_3 = arith.constant dense<0.000000e+00> : vector<256xf32>
    %3 = vector.multi_reduction <add>, %2, %cst_3 [0] : vector<8x256xf32> to vector<256xf32>
    %4 = vector.shape_cast %3 : vector<256xf32> to vector<1x256xf32>
    %cst_4 = arith.constant 1.250000e-01 : f32
    %5 = vector.broadcast %cst_4 : f32 to vector<1x256xf32>
    %6 = arith.mulf %4, %5 : vector<1x256xf32>
    %7 = arith.mulf %2, %2 : vector<8x256xf32>
    %cst_5 = arith.constant dense<0.000000e+00> : vector<256xf32>
    %8 = vector.multi_reduction <add>, %7, %cst_5 [0] : vector<8x256xf32> to vector<256xf32>
    %9 = vector.shape_cast %8 : vector<256xf32> to vector<1x256xf32>
    %cst_6 = arith.constant 1.250000e-01 : f32
    %10 = vector.broadcast %cst_6 : f32 to vector<1x256xf32>
    %11 = arith.mulf %9, %10 : vector<1x256xf32>
    %12 = arith.mulf %6, %6 : vector<1x256xf32>
    %13 = arith.subf %11, %12 : vector<1x256xf32>
    %cst_7 = arith.constant 1.000000e-03 : f32
    %14 = vector.broadcast %cst_7 : f32 to vector<1x256xf32>
    %15 = arith.addf %13, %14 : vector<1x256xf32>
    %16 = math.rsqrt %15 : vector<1x256xf32>
    %c0_8 = arith.constant 0 : index
    %c0_9 = arith.constant 0 : index
    %17 = vector.load %arg3[%c0_8, %c0_9] : memref<1x256xf32, #tpu.memory_space<vmem>>, vector<1x256xf32>
    %18 = arith.mulf %17, %16 : vector<1x256xf32>
    %c0_10 = arith.constant 0 : index
    %c0_11 = arith.constant 0 : index
    %19 = vector.load %arg4[%c0_10, %c0_11] : memref<1x256xf32, #tpu.memory_space<vmem>>, vector<1x256xf32>
    %20 = arith.mulf %6, %18 : vector<1x256xf32>
    %21 = arith.subf %19, %20 : vector<1x256xf32>
    %22 = vector.broadcast %18 : vector<1x256xf32> to vector<8x256xf32>
    %23 = arith.mulf %2, %22 : vector<8x256xf32>
    %24 = vector.broadcast %21 : vector<1x256xf32> to vector<8x256xf32>
    %25 = arith.addf %23, %24 : vector<8x256xf32>
    %cst_12 = arith.constant 0.000000e+00 : f32
    %26 = vector.broadcast %cst_12 : f32 to vector<8x256xf32>
    %27 = arith.maximumf %25, %26 : vector<8x256xf32>
    %c0_13 = arith.constant 0 : index
    %c0_14 = arith.constant 0 : index
    %28 = vector.load %arg5[%c0_13, %c0_14] : memref<8x256xf32, #tpu.memory_space<vmem>>, vector<8x256xf32>
    tpu.vector_store %arg5[%c0_13, %c0_14], %27 {strides = array<i32>} : memref<8x256xf32, #tpu.memory_space<vmem>>, vector<8x256xf32>,
    return
  }
  func.func @transform_0(%arg0: i32) -> (i32, i32) {
    %c0_i32 = arith.constant 0 : i32
    %c0_i32_0 = arith.constant 0 : i32
    %c0_i32_1 = arith.constant 0 : i32
    return %c0_i32, %c0_i32_0 : i32, i32
  }
  func.func @transform_1(%arg0: i32) -> (i32, i32) {
    %c0_i32 = arith.constant 0 : i32
    %c0_i32_0 = arith.constant 0 : i32
    return %arg0, %c0_i32 : i32, i32
  }
  func.func @transform_2(%arg0: i32) -> (i32, i32) {
    %c0_i32 = arith.constant 0 : i32
    %c0_i32_0 = arith.constant 0 : i32
    return %c0_i32, %arg0 : i32, i32
  }
  func.func @transform_3(%arg0: i32) -> (i32, i32) {
    %c0_i32 = arith.constant 0 : i32
    %c0_i32_0 = arith.constant 0 : i32
    return %c0_i32, %arg0 : i32, i32
  }
  func.func @transform_4(%arg0: i32) -> (i32, i32) {
    %c0_i32 = arith.constant 0 : i32
    %c0_i32_0 = arith.constant 0 : i32
    return %c0_i32, %arg0 : i32, i32
  }
}

</mosaic_0001>

<bundles_post_ra>
// kernel: tpu_custom_call.1
= control target key start
LH: loop header
LB: loop body
LE: loop exit
PB: predicated region body
PF: predicated region fallthrough
CT: control target
= control target key end

     0   :  { %9 = vsyncpa [#allocation3], 0  ;;  %s1102_s0 = inlined_call_operand.vmem [shape: f32[8,32], index: 0, kind: input, shape index: {}]   ;;  %s1103_s1 = inlined_call_operand.vmem [shape: f32[512,32], index: 1, kind: input, shape index: {}]   ;;  %s1104_s2 = inlined_call_operand.vmem [shape: f32[1,512], index: 2, kind: input, shape index: {}]   ;;  %s1105_s3 = inlined_call_operand.vmem [shape: f32[1,512], index: 3, kind: input, shape index: {}]   ;;  %s1106_s4 = inlined_call_operand.hbm [shape: f32[8,512], index: 4, kind: output, shape index: {}]  }
   0x1   :  { %11 = vsyncpa [#allocation3 + $0x1], 0  ;;  %s908_s15 = smov 0   ;;  %s910_s16 = smov 0  }
   0x2   :  { %s912_s17 = smov 0   ;;  %s914_s18 = smov 0  }
   0x3 LB: > { %s929_s19 = sadd.s32 4294967295, %s879_s18   ;;  %s643_s20 = sadd.s32 4294967294, %s879_s18   ;;  %s879_s18 = sphi %s914_s18, %s1114_s18   ;;  %s875_s17 = sphi %s912_s17, %s1113_s17   ;;  %s871_s16 = sphi %s910_s16, %s1112_s16   ;;  %s867_s15 = sphi %s908_s15, %s1111_s15  }
   0x4   : > { %s933_s21 = sadd.s32 1, %s879_s18   ;;  %s123_s22 = sadd.s32 1, %s875_s17 }
   0x5   : > { %s120_s23 = ssub.s32 %s879_s18, %s933_s21  ;;  %p133_p0 = scmp.ne.s32.totalorder %s875_s17, %s871_s16 }
   0x6   : > { %p121_p1 = scmp.eq.s32.totalorder %s120_s23, 0  ;;  %p134_p2 = scmp.eq.s32.totalorder %s929_s19, 1 }
   0x7   : > { %p139_p3 = scmp.ne.s32.totalorder %s871_s16, %s867_s15  ;;  %p140_p4 = scmp.eq.s32.totalorder %s643_s20, 1 }
   0x8   : > { %s944_s24 = scalar_select %p121_p1, %s875_s17, %s123_s22  }
   0x9   : > { %p946_p5 = por %p134_p2, %p133_p0  ;;  %p950_p6 = por %p140_p4, %p139_p3 }
   0xa   : > { %p646_p7 = scmp.ge.s32.totalorder %s879_s18, 1  ;;  %p186_p8 = scmp.lt.s32.totalorder %s879_s18, 3 }
   0xc   : > { %p187_p9 = pnand %p646_p7, %p186_p8 }
   0xd   : > { %s648_s27 = sshll.u32 (!%p187_p9), %s929_s19, 5  ;;  %vm270_vm0 = vcmask (!%p187_p9), 261120   ;;  %v960_v0 = vld [vmem:[%s1102_s0] sm:$0xff] (!%p187_p9)  ;;  %s650_s8 = sshll.u32 (!%p187_p9), %s929_s19, 1 }
   0xe   : > { %190 = sbr.rel (%p187_p9) target bundleno = 375 (0x177), region = 36  ;;  %p221_p10 = scmp.lt.s32.totalorder (!%p187_p9), %s648_s27, 63  ;;  %723 = vmatprep.mubr.msk.f32.mxu0 (!%p187_p9), %vm270_vm0, %v960_v0  ;;  %vm971_vm1 = vmpackc.low (!%p187_p9), %vm270_vm0, %vm270_vm0 }
   0xf   : > { %p227_p11 = scmp.lt.s32.totalorder (!%p187_p9), %s650_s8, 3  ;;  %s217_s20 = sand.u32 (!%p187_p9), 1, %s871_s16  }
  0x10   : > { %s647_s22 = sshll.u32 (!%p187_p9), %s217_s20, 4  ;;  %s690_s23 = sshll.u32 (!%p187_p9), %s929_s19, 8 }
  0x11   : > { %s1060_s5 = scalar_lea.hbm (!%p187_p9), %s1106_s4, %s690_s23  ;;  %s552_s6 = scalar_lea.sflag (!%p187_p9), [#allocation3], %s217_s20 }
  0x15   : > { %s1116_s27 = smov (!%p221_p10, %s648_s27), 63  ;;  %s1118_s8 = smov (!%p227_p11, %s650_s8), 3 }
  0x16   : > { %s649_s30 = sshll.u32 %s1116_s27, 3  ;;  %s229_s11 = scalar_lea.vmem %s1104_s2, %s1118_s8 }
  0x17   : > { %s967_s7 = scalar_lea.vmem %s1103_s1, %s649_s30  ;;  %s234_s14 = scalar_lea.vmem %s1105_s3, %s1118_s8 }
  0x18   : > { %v254_v2 = vld [vmem:[%s967_s7 + $0x80] sm:$0xff]  ;;  %v255_v3 = vld [vmem:[%s967_s7 + $0x88] sm:$0xff]  ;;  %v256_v7 = vld [vmem:[%s967_s7 + $0x90] sm:$0xff]  ;;  %s219_s27 = scalar_lea.vmem [#allocation2], %s647_s22 }
  0x19   : > { %v238_v4 = vld [vmem:[%s967_s7] sm:$0xff]  ;;  %v725_v5 = vpack.c.bf16 %v255_v3, %v254_v2  ;;  %v239_v6 = vld [vmem:[%s967_s7 + $0x8] sm:$0xff]  ;;  %v257_v8 = vld [vmem:[%s967_s7 + $0x98] sm:$0xff]  ;;  %s566_s28 = sshll.u32 %s219_s27, 4  ;;  %s1062_s28 = int_to_ptr.vmem [resolvable:$true] %s566_s28 }
  0x1a   : > { %v728_v9 = vpack.c.bf16 %v239_v6, %v238_v4  ;;  %v731_v10 = vpack.c.bf16 %v257_v8, %v256_v7  ;;  %v240_v11 = vld [vmem:[%s967_s7 + $0x10] sm:$0xff]  ;;  %v241_v12 = vld [vmem:[%s967_s7 + $0x18] sm:$0xff]  ;;  %v258_v13 = vld [vmem:[%s967_s7 + $0xa0] sm:$0xff]  ;;  %s817_s19 = scalar_lea.vmem %s1062_s28, 256 }
  0x1b   : > { %727 = vmatprep.subr.msk.bf16.mxu0 %vm971_vm1, %v725_v5  ;;  %v259_v14 = vld [vmem:[%s967_s7 + $0xa8] sm:$0xff]  ;;  %v734_v15 = vpack.c.bf16 %v241_v12, %v240_v11  ;;  %v242_v17 = vld [vmem:[%s967_s7 + $0x20] sm:$0xff]  ;;  %v260_v19 = vld [vmem:[%s967_s7 + $0xb0] sm:$0xff]  ;;  %p818_p12 = scmp.ne.s32.totalorder %s1062_s28, %s817_s19 }
  0x1c   : > { %730 = vmatpush3.bf16.xpose.msk.msra.mxu0 %vm971_vm1, %v728_v9  ;;  %v737_v16 = vpack.c.bf16 %v259_v14, %v258_v13  ;;  %v243_v18 = vld [vmem:[%s967_s7 + $0x28] sm:$0xff]  ;;  %v261_v20 = vld [vmem:[%s967_s7 + $0xb8] sm:$0xff]  ;;  %v244_v23 = vld [vmem:[%s967_s7 + $0x30] sm:$0xff] }
  0x1d   : > { %733 = vmatprep.subr.msk.bf16.mxu0 %vm971_vm1, %v731_v10  ;;  %v740_v21 = vpack.c.bf16 %v243_v18, %v242_v17  ;;  %v743_v22 = vpack.c.bf16 %v261_v20, %v260_v19  ;;  %v245_v24 = vld [vmem:[%s967_s7 + $0x38] sm:$0xff]  ;;  %v262_v25 = vld [vmem:[%s967_s7 + $0xc0] sm:$0xff]  ;;  %v263_v26 = vld [vmem:[%s967_s7 + $0xc8] sm:$0xff]  ;;  %p819_p13 = pnand %p818_p12, %p946_p5 }
  0x1e   : > { %v746_v27 = vpack.c.bf16 %v245_v24, %v244_v23  ;;  %v749_v28 = vpack.c.bf16 %v263_v26, %v262_v25  ;;  %v246_v29 = vld [vmem:[%s967_s7 + $0x40] sm:$0xff]  ;;  %v247_v30 = vld [vmem:[%s967_s7 + $0x48] sm:$0xff]  ;;  %v264_v31 = vld [vmem:[%s967_s7 + $0xd0] sm:$0xff]  ;;  %v881_v24 = vmov 1966171168   ;;  %v486_v26 = vlaneseq }
  0x1f   : > { %v265_v32 = vld [vmem:[%s967_s7 + $0xd8] sm:$0xff]  ;;  %v752_v33 = vpack.c.bf16 %v247_v30, %v246_v29  ;;  %v248_v35 = vld [vmem:[%s967_s7 + $0x50] sm:$0xff]  ;;  %v266_v37 = vld [vmem:[%s967_s7 + $0xe0] sm:$0xff]  ;;  %v484_v25 = vunpack.c.l.s4 %v881_v24  ;;  %p820_p0 = pneg %p819_p13 }
  0x20   : > { %v755_v34 = vpack.c.bf16 %v265_v32, %v264_v31  ;;  %v249_v36 = vld [vmem:[%s967_s7 + $0x58] sm:$0xff]  ;;  %v267_v38 = vld [vmem:[%s967_s7 + $0xe8] sm:$0xff]  ;;  %v250_v41 = vld [vmem:[%s967_s7 + $0x60] sm:$0xff] }
  0x21   : > { %v758_v39 = vpack.c.bf16 %v249_v36, %v248_v35  ;;  %v761_v40 = vpack.c.bf16 %v267_v38, %v266_v37  ;;  %v251_v42 = vld [vmem:[%s967_s7 + $0x68] sm:$0xff]  ;;  %v268_v43 = vld [vmem:[%s967_s7 + $0xf0] sm:$0xff]  ;;  %v269_v44 = vld [vmem:[%s967_s7 + $0xf8] sm:$0xff] }
  0x22   : > { %v764_v45 = vpack.c.bf16 %v251_v42, %v250_v41  ;;  %v767_v46 = vpack.c.bf16 %v269_v44, %v268_v43  ;;  %v252_v47 = vld [vmem:[%s967_s7 + $0x70] sm:$0xff]  ;;  %v253_v48 = vld [vmem:[%s967_s7 + $0x78] sm:$0xff]  ;;  %s882_s7 = smov [#allocation2]  }
  0x23   : > { %v770_v49 = vpack.c.bf16 %v253_v48, %v252_v47  ;;  %v499_v47 = vld [vmem:[%s234_s14] sm:$0x3]  ;;  %s821_s8 = sshll.u32 %s882_s7, 4  ;;  %s822_s8 = int_to_ptr.vmem [resolvable:$false] %s821_s8 }
  0x24   : > { %736 = vmatpush3.bf16.xpose.msk.msra.mxu0 %vm971_vm1, %v734_v15  ;;  %s823_s9 = scalar_lea.vmem %s822_s8, 512  ;;  %p824_p1 = scmp.lt.s32.totalorder %s1062_s28, %s822_s8 }
  0x25   : > { %739 = vmatprep.subr.msk.bf16.mxu0 %vm971_vm1, %v737_v16  ;;  %p825_p2 = scmp.lt.s32.totalorder %s823_s9, %s817_s19 }
  0x27   : > { %p826_p3 = por %p825_p2, %p824_p1 }
  0x29   : > { %p827_p4 = pnand %p826_p3, %p820_p0 }
  0x2c   : > { %742 = vmatpush3.bf16.xpose.msk.msra.mxu0 %vm971_vm1, %v740_v21 }
  0x2d   : > { %745 = vmatprep.subr.msk.bf16.mxu0 %vm971_vm1, %v743_v22 }
  0x34   : > { %748 = vmatpush3.bf16.xpose.msk.msra.mxu0 %vm971_vm1, %v746_v27  ;;  %v485_v27 = vunpack.c.0.s8 %v484_v25 }
  0x35   : > { %751 = vmatprep.subr.msk.bf16.mxu0 %vm971_vm1, %v749_v28  ;;  %v487_v28 = vshrl.u32 %v486_v26, 7 }
  0x37   : > { %v488_v30 = vsub.s32 %v485_v27, %v487_v28  ;;  %v503_v36 = vsub.s32 0, %v487_v28  ;;  %v507_v37 = vsub.s32 1, %v487_v28 }
  0x3c   : > { %754 = vmatpush3.bf16.xpose.msk.msra.mxu0 %vm971_vm1, %v752_v33 }
  0x3d   : > { %757 = vmatprep.subr.msk.bf16.mxu0 %vm971_vm1, %v755_v34  ;;  %v479_v34 = vld [vmem:[%s229_s11] sm:$0x3] }
  0x44   : > { %760 = vmatpush3.bf16.xpose.msk.msra.mxu0 %vm971_vm1, %v758_v39 }
  0x45   : > { %763 = vmatprep.subr.msk.bf16.mxu0 %vm971_vm1, %v761_v40 }
  0x4c   : > { %766 = vmatpush3.bf16.xpose.msk.msra.mxu0 %vm971_vm1, %v764_v45 }
  0x4d   : > { %769 = vmatprep.subr.msk.bf16.mxu0 %vm971_vm1, %v767_v46 }
  0x54   : > { %772 = vmatpush3.bf16.xpose.msk.msra.mxu0 %vm971_vm1, %v770_v49 }
  0x5b   : > { %724 = vmatmul.mubr.msk.f32.vlgmr.msra.gmra.mrb[0].mxu0 %vm270_vm0, %v960_v0 }
 0x12e   : > { %v1041_v50 = vpop.f32.mrb[0].mxu0 }
 0x12f   : > { %v441_v51 = vrot.slane %v1041_v50, 4  ;;  %v455_v52 = vmul.f32 %v1041_v50, %v1041_v50  ;;  %v438_v53 = vpop.f32.mrb[1].mxu0 }
 0x130   : > { %v447_v54 = vrot.slane %v438_v53, 4  ;;  %v456_v55 = vmul.f32 %v438_v53, %v438_v53 }
 0x131   : > { %v442_v56 = vadd.f32 %v441_v51, %v1041_v50  ;;  %v457_v57 = vrot.slane %v455_v52, 4 }
 0x132   : > { %v448_v58 = vadd.f32 %v447_v54, %v438_v53  ;;  %v463_v59 = vrot.slane %v456_v55, 4 }
 0x133   : > { %v443_v60 = vrot.slane %v442_v56, 2  ;;  %v458_v61 = vadd.f32 %v457_v57, %v455_v52 }
 0x134   : > { %v449_v62 = vrot.slane %v448_v58, 2  ;;  %v464_v63 = vadd.f32 %v463_v59, %v456_v55 }
 0x135   : > { %v444_v0 = vadd.f32 %v443_v60, %v442_v56  ;;  %v459_v1 = vrot.slane %v458_v61, 2 }
 0x136   : > { %v450_v2 = vadd.f32 %v449_v62, %v448_v58  ;;  %v465_v3 = vrot.slane %v464_v63, 2 }
 0x137   : > { %v445_v4 = vrot.slane %v444_v0, 1  ;;  %v460_v5 = vadd.f32 %v459_v1, %v458_v61 }
 0x138   : > { %v451_v6 = vrot.slane %v450_v2, 1  ;;  %v466_v7 = vadd.f32 %v465_v3, %v464_v63 }
 0x139   : > { %v446_v8 = vadd.f32 %v445_v4, %v444_v0  ;;  %v461_v9 = vrot.slane %v460_v5, 1 }
 0x13a   : > { %v452_v10 = vadd.f32 %v451_v6, %v450_v2  ;;  %v467_v11 = vrot.slane %v466_v7, 1 }
 0x13b   : > { %v453_v12 = vmul.f32 0.125, %v446_v8  ;;  %v462_v13 = vadd.f32 %v461_v9, %v460_v5 }
 0x13c   : > { %v454_v14 = vmul.f32 0.125, %v452_v10  ;;  %v468_v15 = vadd.f32 %v467_v11, %v466_v7 }
 0x13d   : > { %v469_v16 = vmul.f32 0.125, %v462_v13  ;;  %v471_v17 = vmul.f32 %v453_v12, %v453_v12 }
 0x13e   : > { %v470_v18 = vmul.f32 0.125, %v468_v15  ;;  %v472_v19 = vmul.f32 %v454_v14, %v454_v14 }
 0x13f   : > { %v473_v20 = vsub.f32 %v469_v16, %v471_v17 }
 0x140   : > { %v474_v21 = vsub.f32 %v470_v18, %v472_v19 }
 0x141   : > { %v475_v22 = vadd.f32 0.001, %v473_v20 }
 0x142   : > { %v476_v23 = vadd.f32 0.001, %v474_v21 }
 0x143   : > { %813 = vrsqrt.f32 %v475_v22 }
 0x144   : > { %815 = vrsqrt.f32 %v476_v23 }
 0x14d   : > { %v814_v29 = vpop.eup %813 }
 0x14e   : > { %v816_v31 = vpop.eup %815 }
 0x14f   : > { %v482_v32 = vcombine.low %v814_v29, %v816_v31 }
 0x151   : > { %v489_v33 = vrot.slane %v482_v32, %v488_v30 }
 0x153   : > { %v496_v35 = vrot.slane %v489_v33, %v488_v30 }
 0x155   : > { %v498_v38 = vmul.f32 %v496_v35, %v479_v34 }
 0x157   : > { %v504_v39 = vrot.slane %v498_v38, %v503_v36  ;;  %v508_v40 = vrot.slane %v498_v38, %v507_v37 }
 0x159   : > { %v511_v41 = vmul.f32 %v504_v39, %v453_v12  ;;  %v512_v42 = vmul.f32 %v508_v40, %v454_v14  ;;  %v533_v43 = vmul.f32 %v508_v40, %v438_v53  ;;  %v532_v44 = vmul.f32 %v504_v39, %v1041_v50 }
 0x15b   : > { %v515_v45 = vcombine.low %v511_v41, %v512_v42 }
 0x15d   : > { %v522_v46 = vrot.slane %v515_v45, %v488_v30 }
 0x15f   : > { %v529_v48 = vrot.slane %v522_v46, %v488_v30 }
 0x161   : > { %v531_v49 = vsub.f32 %v499_v47, %v529_v48 }
 0x163   : > { %v542_v51 = vrot.slane %v531_v49, %v507_v37  ;;  %v538_v52 = vrot.slane %v531_v49, %v503_v36 }
 0x165   : > { %v546_v53 = vadd.f32 %v542_v51, %v533_v43  ;;  %v545_v54 = vadd.f32 %v538_v52, %v532_v44 }
 0x167   : > { %v548_v50 = vmax.f32 %v546_v53, 0.0  ;;  %v547_v55 = vmax.f32 %v545_v54, 0.0 }
 0x169   : > { %549 = vst [vmem:[%s219_s27] sm:$0xff] %v547_v55  ;;  %550 = vst [vmem:[%s219_s27 + $0x8] sm:$0xff] %v548_v50 }
 0x16a   : > { %830 = shalt.err (!%p827_p4)
}
 0x16b   : > { %s831_s10 = scalar_lea.hbm %s1060_s5, 256  ;;  %s835_s13 = scalar_lea.hbm %s1106_s4, 512 }
 0x16c   : > { %p832_p7 = scmp.ne.s32.totalorder %s1060_s5, %s831_s10  ;;  %p836_p10 = scmp.lt.u32.totalorder %s1060_s5, %s1106_s4 }
 0x16d   : > { %p837_p11 = scmp.lt.u32.totalorder %s835_s13, %s831_s10  ;;  %p839_p13 = scmp.lt.u32.totalorder %s831_s10, %s1060_s5 }
 0x16e   : > { %p833_p8 = pnand %p832_p7, %p946_p5 }
 0x16f   : > { %p838_p12 = por %p837_p11, %p836_p10 }
 0x170   : > { %p834_p9 = pneg %p833_p8 }
 0x171   : > { %p840_p0 = por %p839_p13, %p838_p12 }
 0x173   : > { %p841_p1 = pnand %p840_p0, %p834_p9 }
 0x175   : > { %844 = shalt.err (!%p841_p1)
}
 0x176   : > { %773 = dma.vmem_to_hbm [thread:$0]  (%p946_p5), %s1062_s28, 256, %s1060_s5, %s552_s6  }
 0x177 PF: > { %p779_p2 = scmp.ge.s32.totalorder %s879_s18, 2  ;;  %s578_s22 = sand.u32 1, %s867_s15  }
 0x178   : > { %s579_s23 = scalar_lea.sflag [#allocation3], %s578_s22 }
 0x179   : > { %p776_p3 = pnand %p779_p2, %p950_p6 }
 0x17b   : > { %862 = dma.done.wait (!%p776_p3), %s579_s23, 256  }
 0x17c   : > { %864 = vsyncadd (!%p776_p3), %s579_s23, 4294967040  ;;  %p14_p4 = scmp.ge.s32.totalorder %s933_s21, 4   ;;  %s1111_s15 = smov %s871_s16 }
 0x17d   : > { %s1112_s16 = smov %s875_s17  ;;  %s1113_s17 = smov %s944_s24 }
 0x17e   : > { %s1114_s18 = smov %s933_s21  ;;  %16 = sbr.rel (!%p14_p4) target bundleno = 3 (0x3), region = 77 }
 0x185   :  { %584 = vsyncpa [#allocation3], 1 }
 0x186   :  { %586 = vsyncpa [#allocation3 + $0x1], 1 }

</bundles_post_ra>
